<compile_context>
chip_gen: v6e
topology: v6e:2x2x1
jax: 0.10.0
libtpu: 0.0.40
codegen_flags: <defaults>
</compile_context>

<pallas_src>
import functools

import jax
import jax.numpy as jnp
import numpy as np
from jax.experimental import pallas as pl
from jax.experimental.pallas import tpu as pltpu


def _round_up(x, m):
    return (x + m - 1) // m * m


# ----------------------------------------------------------------------------
# Kernel
# ----------------------------------------------------------------------------
def temporal_block_kernel(x_ref, w1_ref, b1_ref, w2_ref, b2_ref, out_ref, *,
                          L, dilation, K, c_out, c_in_pad, c_hid_pad,
                          identity_res):
    M = x_ref.shape[0]
    # per-row time index within its length-L sequence (rows are (batch, time))
    t_local = jax.lax.broadcasted_iota(jnp.int32, (M, 1), 0) % L

    def causal_shift(v, s):
        # v[row t] -> v[row t - s] within each length-L sequence, zero-filled.
        if s == 0:
            return v
        if s >= L:                      # this tap only ever reads left padding
            return jnp.zeros_like(v)
        rolled = pltpu.roll(v, shift=s, axis=0)   # wraps land only in masked rows
        return jnp.where(t_local >= s, rolled, jnp.zeros_like(rolled))

    def dilated_causal_conv(v, w_ref, b_ref, c_pad):
        # Lane-pad channels to a multiple of 128 so the im2col concat below is
        # pure vreg stacking, then stack the K causal shifts along lanes:
        # ONE (M, K*c_pad) @ (K*c_pad, N) MXU matmul with f32 accumulation.
        c = v.shape[-1]
        if c_pad != c:
            v = jnp.concatenate(
                [v, jnp.zeros((M, c_pad - c), v.dtype)], axis=-1)
        taps = [causal_shift(v, (K - 1 - k) * dilation).astype(jnp.bfloat16)
                for k in range(K)]
        col = jnp.concatenate(taps, axis=-1)                 # (M, K*c_pad) bf16
        return jnp.dot(col, w_ref[...],
                       preferred_element_type=jnp.float32) + b_ref[...]

    x = x_ref[...].astype(jnp.float32)            # (M, C_in); shifts run in f32

    # conv1 -> chomp -> ReLU  (1x1 downsample fused as extra output columns)
    y1 = dilated_causal_conv(x, w1_ref, b1_ref, c_in_pad)     # (M, N1) f32
    if identity_res:
        h1 = jnp.maximum(y1, 0.0)
        res = x                                    # identity residual: no matmul
    else:
        h1 = jnp.maximum(y1[:, :c_out], 0.0)
        res = y1[:, c_out:]                        # fused 1x1 downsample output

    # conv2 -> chomp -> ReLU       (dropouts are identity in inference mode)
    h2 = jnp.maximum(dilated_causal_conv(h1, w2_ref, b2_ref, c_hid_pad), 0.0)

    out_ref[...] = jnp.maximum(h2 + res, 0.0).astype(out_ref.dtype)


# ----------------------------------------------------------------------------
# Tiling / VMEM helpers
# ----------------------------------------------------------------------------
def _pick_batch_tile(B, L, bytes_per_row, vmem_budget):
    """Rows-per-step sweet spot ~1024, >=2 grid steps when possible (software
    pipelining + v7x 2-TC sharding), capped by the per-step VMEM budget."""
    target_rows = 1024
    tb = min(B, max(1, target_rows // L),
             max(1, vmem_budget // max(1, bytes_per_row * L)))
    if tb >= B and B > 1:
        tb = B // 2                      # guarantee >= 2 grid steps
    tb = max(tb, 1)

    def _ok(t):
        # TB must divide B; TB*L must be a multiple of 16 (bf16 sublane tile)
        # unless the block covers the full row count.
        return B % t == 0 and ((t * L) % 16 == 0 or t == B)

    while tb > 1 and not _ok(tb):
        tb -= 1
    if not _ok(tb):
        tb = B                           # single full block always satisfies layout
    return tb


# ----------------------------------------------------------------------------
# Wrappers
# ----------------------------------------------------------------------------
def temporal_block_nlc(x, p, *, dilation, kernel_size=3, stride=1, padding=None,
                       batch_tile=None):
    """Fused TemporalBlock on channels-last input.

    x: (B, L, C_in) (any float dtype; cast to bf16 at the kernel boundary).
    Returns (B, L, C_out) bf16 — feed directly into the next block.
    """
    meta = p["meta"]
    K = meta["K"]
    assert kernel_size == K
    assert stride == 1, "TODO(synk): stride != 1 not supported (TCN uses stride=1)"
    if padding is None:
        padding = (K - 1) * dilation
    assert padding == (K - 1) * dilation, "only the causal (Chomp1d) configuration"

    B, L, c_in = x.shape
    c_out = meta["c_out"]
    c_in_pad, c_hid_pad = meta["c_in_pad"], meta["c_hid_pad"]
    assert c_in == meta["c_in"]
    identity_res = not meta["has_down"]
    n1 = p["w1"].shape[1]
    assert n1 == (c_out if identity_res else 2 * c_out)
    if identity_res:
        assert c_in == c_out

    # ---- VMEM-aware tile selection (64 MiB on v7x vs 128 MiB on v5e/v6e) ----
    try:
        vmem_cap = int(pltpu.get_tpu_info().vmem_capacity_bytes)
    except Exception:
        vmem_cap = 64 * 1024 * 1024
    vmem_limit = int(min(vmem_cap * 3 // 4, 100 * 1024 * 1024))
    bytes_per_row = (4 * (c_in + c_out)                 # double-buffered bf16 I/O
                     + 2 * K * (c_in_pad + c_hid_pad)   # bf16 im2col columns
                     + 4 * (c_in_pad + c_hid_pad)       # f32 shift working copies
                     + 4 * (n1 + 3 * c_out))            # f32 y1 / h1 / h2 / res
    if batch_tile is None:
        batch_tile = _pick_batch_tile(B, L, bytes_per_row, vmem_limit // 2)
    TB = batch_tile
    assert B % TB == 0
    M = TB * L
    assert M % 16 == 0 or TB == B, \
        "batch_tile*L must be a multiple of 16 (bf16 sublane layout)"

    x2 = x.reshape(B * L, c_in).astype(jnp.bfloat16)    # free: merges leading dims

    kernel = functools.partial(
        temporal_block_kernel, L=L, dilation=dilation, K=K, c_out=c_out,
        c_in_pad=c_in_pad, c_hid_pad=c_hid_pad, identity_res=identity_res)

    y2 = pl.pallas_call(
        kernel,
        out_shape=jax.ShapeDtypeStruct((B * L, c_out), jnp.bfloat16),
        grid=(B // TB,),
        in_specs=[
            pl.BlockSpec((M, c_in), lambda i: (i, 0)),
            pl.BlockSpec(p["w1"].shape, lambda i: (0, 0)),
            pl.BlockSpec(p["b1"].shape, lambda i: (0, 0)),
            pl.BlockSpec(p["w2"].shape, lambda i: (0, 0)),
            pl.BlockSpec(p["b2"].shape, lambda i: (0, 0)),
        ],
        out_specs=pl.BlockSpec((M, c_out), lambda i: (i, 0)),
        compiler_params=pltpu.CompilerParams(
            dimension_semantics=("parallel",),
            vmem_limit_bytes=vmem_limit),
    )(x2, p["w1"], p["b1"], p["w2"], p["b2"])

    return y2.reshape(B, L, c_out)


def temporal_block(x_ncl, p, **kwargs):
    """PyTorch-interface wrapper: (B, C_in, L) -> (B, C_out, L).
    Prefer temporal_block_nlc and keep the whole TCN channels-last."""
    y = temporal_block_nlc(jnp.transpose(x_ncl, (0, 2, 1)), p, **kwargs)
    return jnp.transpose(y, (0, 2, 1))


# ----------------------------------------------------------------------------
# Parameter construction / packing (weight_norm materialized in glue)
# ----------------------------------------------------------------------------
def _materialize_weight_norm(v, g):
    # v: (C_out, C_in, K), g: (C_out,)  ->  w = g * v / ||v||_(dims 1,2)
    norm = jnp.sqrt(jnp.sum(v * v, axis=(1, 2), keepdims=True))
    return (g[:, None, None] / norm) * v


def init_temporal_block_params(key, n_inputs, n_outputs, kernel_size):
    ks = jax.random.split(key, 8)

    def conv_init(kv, kg, kb, c_in, c_out):
        v = 0.01 * jax.random.normal(kv, (c_out, c_in, kernel_size), jnp.float32)
        g = 1.0 + 0.1 * jax.random.normal(kg, (c_out,), jnp.float32)
        b = 0.01 * jax.random.normal(kb, (c_out,), jnp.float32)
        return v, g, b

    raw = {}
    raw["conv1_v"], raw["conv1_g"], raw["conv1_b"] = conv_init(
        ks[0], ks[1], ks[2], n_inputs, n_outputs)
    raw["conv2_v"], raw["conv2_g"], raw["conv2_b"] = conv_init(
        ks[3], ks[4], ks[5], n_outputs, n_outputs)
    if n_inputs != n_outputs:
        raw["down_w"] = 0.01 * jax.random.normal(
            ks[6], (n_outputs, n_inputs, 1), jnp.float32)
        raw["down_b"] = 0.01 * jax.random.normal(ks[7], (n_outputs,), jnp.float32)
    return raw


def pack_params_for_kernel(raw, compute_dtype=jnp.bfloat16):
    c_out, c_in, K = raw["conv1_v"].shape
    c_in_pad = _round_up(c_in, 128)
    c_hid_pad = _round_up(c_out, 128)

    def im2col_weight(w, c_pad):
        # (C_out, C_in, K) -> (K * c_pad, C_out); row index = tap*c_pad + ci.
        co, ci, k = w.shape
        wt = jnp.transpose(w, (2, 1, 0))                       # (K, C_in, C_out)
        if c_pad != ci:
            wt = jnp.pad(wt, ((0, 0), (0, c_pad - ci), (0, 0)))
        return wt.reshape(k * c_pad, co)

    w1 = im2col_weight(_materialize_weight_norm(raw["conv1_v"], raw["conv1_g"]),
                       c_in_pad)
    b1 = raw["conv1_b"].reshape(1, -1)
    has_down = "down_w" in raw
    if has_down:
        # Fuse the 1x1 downsample into conv1's matmul as extra output columns:
        # it only touches the shift-0 tap (k = K-1) rows of the im2col matrix.
        wd = jnp.zeros((K * c_in_pad, c_out), jnp.float32)
        wd = wd.at[(K - 1) * c_in_pad:(K - 1) * c_in_pad + c_in, :].set(
            jnp.transpose(raw["down_w"][:, :, 0], (1, 0)))
        w1 = jnp.concatenate([w1, wd], axis=1)                 # (K*c_in_pad, 2*C_out)
        b1 = jnp.concatenate([b1, raw["down_b"].reshape(1, -1)], axis=1)

    w2 = im2col_weight(_materialize_weight_norm(raw["conv2_v"], raw["conv2_g"]),
                       c_hid_pad)
    b2 = raw["conv2_b"].reshape(1, -1)

    return {
        "w1": w1.astype(compute_dtype), "b1": b1.astype(jnp.float32),
        "w2": w2.astype(compute_dtype), "b2": b2.astype(jnp.float32),
        "meta": dict(c_in=int(c_in), c_out=int(c_out), K=int(K),
                     c_in_pad=int(c_in_pad), c_hid_pad=int(c_hid_pad),
                     has_down=has_down),
    }


# ----------------------------------------------------------------------------
# Pure-JAX reference (PyTorch semantics, NCL layout)
# ----------------------------------------------------------------------------
def _ref_temporal_block(x, raw, *, dilation, kernel_size=3, matmul_dtype=None,
                        quantize_io=False):
    K = kernel_size
    pad = (K - 1) * dilation
    B, c_in, L = x.shape
    if matmul_dtype is None:
        cast = lambda a: a
        prec = jax.lax.Precision.HIGHEST
    else:
        cast = lambda a: a.astype(matmul_dtype)
        prec = None
    if quantize_io:
        x = x.astype(jnp.bfloat16).astype(jnp.float32)

    def causal_conv(xin, v, g, b):
        w = _materialize_weight_norm(v, g)
        xp = jnp.pad(xin, ((0, 0), (0, 0), (pad, 0)))
        out = sum(
            jnp.einsum("bct,oc->bot",
                       cast(xp[:, :, k * dilation:k * dilation + L]),
                       cast(w[:, :, k]),
                       precision=prec, preferred_element_type=jnp.float32)
            for k in range(K))
        return out + b[None, :, None]

    h1 = jnp.maximum(causal_conv(x, raw["conv1_v"], raw["conv1_g"],
                                 raw["conv1_b"]), 0.0)
    h2 = jnp.maximum(causal_conv(h1, raw["conv2_v"], raw["conv2_g"],
                                 raw["conv2_b"]), 0.0)
    if "down_w" in raw:
        res = jnp.einsum("bct,oc->bot", cast(x), cast(raw["down_w"][:, :, 0]),
                         precision=prec, preferred_element_type=jnp.float32) \
              + raw["down_b"][None, :, None]
    else:
        res = x
    out = jnp.maximum(h2 + res, 0.0)
    if quantize_io:
        out = out.astype(jnp.bfloat16).astype(jnp.float32)
    return out


# ----------------------------------------------------------------------------
if __name__ == "__main__":
    key = jax.random.PRNGKey(0)
    kx, k1, k2 = jax.random.split(key, 3)

    B, L, K = 8, 16, 3
    C0, C1 = 64, 128

    # PyTorch-style NCL input for the first block
    x_ncl = jax.random.normal(kx, (B, C0, L), jnp.float32)

    raw1 = init_temporal_block_params(k1, C0, C1, K)   # downsample residual path
    raw2 = init_temporal_block_params(k2, C1, C1, K)   # identity residual path
    p1 = pack_params_for_kernel(raw1)
    p2 = pack_params_for_kernel(raw2)

    # Channels-last end-to-end: one transpose in, one transpose out for the stack.
    x_nlc = jnp.transpose(x_ncl, (0, 2, 1)).astype(jnp.bfloat16)
    y1 = temporal_block_nlc(x_nlc, p1, dilation=2, kernel_size=K,
                            padding=(K - 1) * 2)
    y2 = temporal_block_nlc(y1, p2, dilation=4, kernel_size=K,
                            padding=(K - 1) * 4)
    y2 = jax.block_until_ready(y2)
    assert y2.shape == (B, L, C1), y2.shape
    assert y2.dtype == jnp.bfloat16, y2.dtype
    y_ncl = jnp.transpose(y2, (0, 2, 1)).astype(jnp.float32)

    # bf16-matched reference (same quantization as the kernel): tight check
    r1_bf = _ref_temporal_block(x_ncl, raw1, dilation=2, kernel_size=K,
                                matmul_dtype=jnp.bfloat16, quantize_io=True)
    r2_bf = _ref_temporal_block(r1_bf, raw2, dilation=4, kernel_size=K,
                                matmul_dtype=jnp.bfloat16, quantize_io=True)
    np.testing.assert_allclose(np.asarray(y_ncl), np.asarray(r2_bf),
                               atol=2e-3, rtol=1e-2)

    # full-f32 reference (exact PyTorch math): loose check of the bf16 envelope
    r1_f32 = _ref_temporal_block(x_ncl, raw1, dilation=2, kernel_size=K)
    r2_f32 = _ref_temporal_block(r1_f32, raw2, dilation=4, kernel_size=K)
    np.testing.assert_allclose(np.asarray(y_ncl), np.asarray(r2_f32),
                               atol=3e-2, rtol=3e-2)

    print("KERNEL_OK")
</pallas_src>

<mosaic_0001>
module attributes {stable_mosaic.version = 11 : i64} {
  func.func @temporal_block_kernel(%arg0: i32, %arg1: memref<64x64xbf16, #tpu.memory_space<vmem>>, %arg2: memref<384x256xbf16, #tpu.memory_space<vmem>>, %arg3: memref<1x256xf32, #tpu.memory_space<vmem>>, %arg4: memref<384x128xbf16, #tpu.memory_space<vmem>>, %arg5: memref<1x128xf32, #tpu.memory_space<vmem>>, %arg6: memref<64x128xbf16, #tpu.memory_space<vmem>>) attributes {dimension_semantics = [#tpu.dimension_semantics<parallel>], iteration_bounds = array<i64: 2>, scalar_prefetch = 0 : i64, scratch_operands = 0 : i64, tpu.core_type = #tpu.core_type<tc>, window_params = [{transform_indices = @transform_0, window_bounds = array<i64: 64, 64>}, {pipeline_mode = #tpu.pipeline_mode<synchronous>, transform_indices = @transform_1, window_bounds = array<i64: 384, 256>}, {pipeline_mode = #tpu.pipeline_mode<synchronous>, transform_indices = @transform_2, window_bounds = array<i64: 1, 256>}, {pipeline_mode = #tpu.pipeline_mode<synchronous>, transform_indices = @transform_3, window_bounds = array<i64: 384, 128>}, {pipeline_mode = #tpu.pipeline_mode<synchronous>, transform_indices = @transform_4, window_bounds = array<i64: 1, 128>}, {transform_indices = @transform_5, window_bounds = array<i64: 64, 128>}]} {
    %0 = tpu.iota {dimensions = array<i32: 0>} : vector<64x1xi32>
    %c16_i32 = arith.constant 16 : i32
    %c0_i32 = arith.constant 0 : i32
    %1 = arith.cmpi eq, %c16_i32, %c0_i32 : i32
    %c1_i32 = arith.constant 1 : i32
    %2 = arith.select %1, %c1_i32, %c16_i32 : i32
    %3 = vector.broadcast %2 : i32 to vector<64x1xi32>
    %4 = arith.remsi %0, %3 : vector<64x1xi32>
    %c0_i32_0 = arith.constant 0 : i32
    %5 = vector.broadcast %c0_i32_0 : i32 to vector<64x1xi32>
    %6 = arith.cmpi ne, %4, %5 : vector<64x1xi32>
    %c0_i32_1 = arith.constant 0 : i32
    %7 = vector.broadcast %c0_i32_1 : i32 to vector<64x1xi32>
    %8 = arith.cmpi slt, %4, %7 : vector<64x1xi32>
    %c0_i32_2 = arith.constant 0 : i32
    %9 = arith.cmpi slt, %2, %c0_i32_2 : i32
    %10 = vector.broadcast %9 : i1 to vector<64x1xi1>
    %11 = vector.broadcast %10 : vector<64x1xi1> to vector<64x1xi1>
    %12 = arith.xori %8, %11 : vector<64x1xi1>
    %13 = arith.andi %12, %6 : vector<64x1xi1>
    %14 = vector.broadcast %2 : i32 to vector<64x1xi32>
    %15 = arith.addi %4, %14 : vector<64x1xi32>
    %16 = arith.select %13, %15, %4 : vector<64x1xi1>, vector<64x1xi32>
    %c0 = arith.constant 0 : index
    %c0_3 = arith.constant 0 : index
    %17 = vector.load %arg1[%c0, %c0_3] : memref<64x64xbf16, #tpu.memory_space<vmem>>, vector<64x64xbf16>
    %18 = arith.extf %17 : vector<64x64xbf16> to vector<64x64xf32>
    %cst = arith.constant 0.000000e+00 : f32
    %19 = vector.broadcast %cst : f32 to vector<64x64xf32>
    %20 = tpu.concatenate %18, %19 in 1 : vector<64x64xf32>, vector<64x64xf32> -> vector<64x128xf32>
    %c4_i32 = arith.constant 4 : i32
    %21 = tpu.dynamic_rotate %20 by %c4_i32 dim 0 : vector<64x128xf32>, i32 -> vector<64x128xf32>
    %c4_i32_4 = arith.constant 4 : i32
    %22 = vector.broadcast %c4_i32_4 : i32 to vector<64x1xi32>
    %23 = arith.cmpi sge, %16, %22 : vector<64x1xi32>
    %cst_5 = arith.constant 0.000000e+00 : f32
    %24 = vector.broadcast %cst_5 : f32 to vector<64x128xf32>
    %25 = vector.shape_cast %23 : vector<64x1xi1> to vector<64x1xi1>
    %26 = vector.broadcast %25 : vector<64x1xi1> to vector<64x128xi1>
    %27 = arith.select %26, %21, %24 : vector<64x128xi1>, vector<64x128xf32>
    %28 = arith.truncf %27 : vector<64x128xf32> to vector<64x128xbf16>
    %c2_i32 = arith.constant 2 : i32
    %29 = tpu.dynamic_rotate %20 by %c2_i32 dim 0 : vector<64x128xf32>, i32 -> vector<64x128xf32>
    %c2_i32_6 = arith.constant 2 : i32
    %30 = vector.broadcast %c2_i32_6 : i32 to vector<64x1xi32>
    %31 = arith.cmpi sge, %16, %30 : vector<64x1xi32>
    %cst_7 = arith.constant 0.000000e+00 : f32
    %32 = vector.broadcast %cst_7 : f32 to vector<64x128xf32>
    %33 = vector.shape_cast %31 : vector<64x1xi1> to vector<64x1xi1>
    %34 = vector.broadcast %33 : vector<64x1xi1> to vector<64x128xi1>
    %35 = arith.select %34, %29, %32 : vector<64x128xi1>, vector<64x128xf32>
    %36 = arith.truncf %35 : vector<64x128xf32> to vector<64x128xbf16>
    %37 = arith.truncf %20 : vector<64x128xf32> to vector<64x128xbf16>
    %38 = tpu.concatenate %28, %36, %37 in 1 : vector<64x128xbf16>, vector<64x128xbf16>, vector<64x128xbf16> -> vector<64x384xbf16>
    %c0_8 = arith.constant 0 : index
    %c0_9 = arith.constant 0 : index
    %39 = vector.load %arg2[%c0_8, %c0_9] : memref<384x256xbf16, #tpu.memory_space<vmem>>, vector<384x256xbf16>
    %cst_10 = arith.constant dense<0.000000e+00> : vector<64x256xf32>
    %40 = tpu.matmul %38, %39, %cst_10 {dimension_numbers = #tpu.dot_dimension_numbers<[1], [0], [0], [1], [0, 0, 1, 1], [], []>} : vector<64x384xbf16>, vector<384x256xbf16>, vector<64x256xf32> -> vector<64x256xf32>
    %c0_11 = arith.constant 0 : index
    %c0_12 = arith.constant 0 : index
    %41 = vector.load %arg3[%c0_11, %c0_12] : memref<1x256xf32, #tpu.memory_space<vmem>>, vector<1x256xf32>
    %42 = vector.broadcast %41 : vector<1x256xf32> to vector<64x256xf32>
    %43 = arith.addf %40, %42 : vector<64x256xf32>
    %44 = vector.extract_strided_slice %43 {offsets = [0, 0], sizes = [64, 128], strides = [1, 1]} : vector<64x256xf32> to vector<64x128xf32>
    %cst_13 = arith.constant 0.000000e+00 : f32
    %45 = vector.broadcast %cst_13 : f32 to vector<64x128xf32>
    %46 = arith.maximumf %44, %45 : vector<64x128xf32>
    %47 = vector.extract_strided_slice %43 {offsets = [0, 128], sizes = [64, 128], strides = [1, 1]} : vector<64x256xf32> to vector<64x128xf32>
    %c4_i32_14 = arith.constant 4 : i32
    %48 = tpu.dynamic_rotate %46 by %c4_i32_14 dim 0 : vector<64x128xf32>, i32 -> vector<64x128xf32>
    %c4_i32_15 = arith.constant 4 : i32
    %49 = vector.broadcast %c4_i32_15 : i32 to vector<64x1xi32>
    %50 = arith.cmpi sge, %16, %49 : vector<64x1xi32>
    %cst_16 = arith.constant 0.000000e+00 : f32
    %51 = vector.broadcast %cst_16 : f32 to vector<64x128xf32>
    %52 = vector.shape_cast %50 : vector<64x1xi1> to vector<64x1xi1>
    %53 = vector.broadcast %52 : vector<64x1xi1> to vector<64x128xi1>
    %54 = arith.select %53, %48, %51 : vector<64x128xi1>, vector<64x128xf32>
    %55 = arith.truncf %54 : vector<64x128xf32> to vector<64x128xbf16>
    %c2_i32_17 = arith.constant 2 : i32
    %56 = tpu.dynamic_rotate %46 by %c2_i32_17 dim 0 : vector<64x128xf32>, i32 -> vector<64x128xf32>
    %c2_i32_18 = arith.constant 2 : i32
    %57 = vector.broadcast %c2_i32_18 : i32 to vector<64x1xi32>
    %58 = arith.cmpi sge, %16, %57 : vector<64x1xi32>
    %cst_19 = arith.constant 0.000000e+00 : f32
    %59 = vector.broadcast %cst_19 : f32 to vector<64x128xf32>
    %60 = vector.shape_cast %58 : vector<64x1xi1> to vector<64x1xi1>
    %61 = vector.broadcast %60 : vector<64x1xi1> to vector<64x128xi1>
    %62 = arith.select %61, %56, %59 : vector<64x128xi1>, vector<64x128xf32>
    %63 = arith.truncf %62 : vector<64x128xf32> to vector<64x128xbf16>
    %64 = arith.truncf %46 : vector<64x128xf32> to vector<64x128xbf16>
    %65 = tpu.concatenate %55, %63, %64 in 1 : vector<64x128xbf16>, vector<64x128xbf16>, vector<64x128xbf16> -> vector<64x384xbf16>
    %c0_20 = arith.constant 0 : index
    %c0_21 = arith.constant 0 : index
    %66 = vector.load %arg4[%c0_20, %c0_21] : memref<384x128xbf16, #tpu.memory_space<vmem>>, vector<384x128xbf16>
    %cst_22 = arith.constant dense<0.000000e+00> : vector<64x128xf32>
    %67 = tpu.matmul %65, %66, %cst_22 {dimension_numbers = #tpu.dot_dimension_numbers<[1], [0], [0], [1], [0, 0, 1, 1], [], []>} : vector<64x384xbf16>, vector<384x128xbf16>, vector<64x128xf32> -> vector<64x128xf32>
    %c0_23 = arith.constant 0 : index
    %c0_24 = arith.constant 0 : index
    %68 = vector.load %arg5[%c0_23, %c0_24] : memref<1x128xf32, #tpu.memory_space<vmem>>, vector<1x128xf32>
    %69 = vector.broadcast %68 : vector<1x128xf32> to vector<64x128xf32>
    %70 = arith.addf %67, %69 : vector<64x128xf32>
    %cst_25 = arith.constant 0.000000e+00 : f32
    %71 = vector.broadcast %cst_25 : f32 to vector<64x128xf32>
    %72 = arith.maximumf %70, %71 : vector<64x128xf32>
    %73 = arith.addf %72, %47 : vector<64x128xf32>
    %cst_26 = arith.constant 0.000000e+00 : f32
    %74 = vector.broadcast %cst_26 : f32 to vector<64x128xf32>
    %75 = arith.maximumf %73, %74 : vector<64x128xf32>
    %76 = arith.truncf %75 : vector<64x128xf32> to vector<64x128xbf16>
    %c0_27 = arith.constant 0 : index
    %c0_28 = arith.constant 0 : index
    %77 = vector.load %arg6[%c0_27, %c0_28] : memref<64x128xbf16, #tpu.memory_space<vmem>>, vector<64x128xbf16>
    tpu.vector_store %arg6[%c0_27, %c0_28], %76 {strides = array<i32>} : memref<64x128xbf16, #tpu.memory_space<vmem>>, vector<64x128xbf16>,
    return
  }
  func.func @transform_0(%arg0: i32) -> (i32, i32) {
    %c0_i32 = arith.constant 0 : i32
    %c0_i32_0 = arith.constant 0 : i32
    return %arg0, %c0_i32 : i32, i32
  }
  func.func @transform_1(%arg0: i32) -> (i32, i32) {
    %c0_i32 = arith.constant 0 : i32
    %c0_i32_0 = arith.constant 0 : i32
    %c0_i32_1 = arith.constant 0 : i32
    return %c0_i32, %c0_i32_0 : i32, i32
  }
  func.func @transform_2(%arg0: i32) -> (i32, i32) {
    %c0_i32 = arith.constant 0 : i32
    %c0_i32_0 = arith.constant 0 : i32
    %c0_i32_1 = arith.constant 0 : i32
    return %c0_i32, %c0_i32_0 : i32, i32
  }
  func.func @transform_3(%arg0: i32) -> (i32, i32) {
    %c0_i32 = arith.constant 0 : i32
    %c0_i32_0 = arith.constant 0 : i32
    %c0_i32_1 = arith.constant 0 : i32
    return %c0_i32, %c0_i32_0 : i32, i32
  }
  func.func @transform_4(%arg0: i32) -> (i32, i32) {
    %c0_i32 = arith.constant 0 : i32
    %c0_i32_0 = arith.constant 0 : i32
    %c0_i32_1 = arith.constant 0 : i32
    return %c0_i32, %c0_i32_0 : i32, i32
  }
  func.func @transform_5(%arg0: i32) -> (i32, i32) {
    %c0_i32 = arith.constant 0 : i32
    %c0_i32_0 = arith.constant 0 : i32
    return %arg0, %c0_i32 : i32, i32
  }
}

</mosaic_0001>

<bundles_post_ra>
// kernel: tpu_custom_call.1
= control target key start
LH: loop header
LB: loop body
LE: loop exit
PB: predicated region body
PF: predicated region fallthrough
CT: control target
= control target key end

     0   :  { %10 = vsyncpa [#allocation3], 0  ;;  %s2626_s0 = inlined_call_operand.vmem [shape: bf16[128,64], index: 0, kind: input, shape index: {}]   ;;  %s2627_s1 = inlined_call_operand.hbm [shape: bf16[384,256], index: 1, kind: input, shape index: {}]   ;;  %s2628_s2 = inlined_call_operand.vmem [shape: f32[1,256], index: 2, kind: input, shape index: {}]   ;;  %s2629_s3 = inlined_call_operand.hbm [shape: bf16[384,128], index: 3, kind: input, shape index: {}]   ;;  %s2630_s4 = inlined_call_operand.vmem [shape: f32[1,128], index: 4, kind: input, shape index: {}]   ;;  %s2631_s5 = inlined_call_operand.hbm [shape: bf16[128,128], index: 5, kind: output, shape index: {}]  }
   0x1   :  { %11 = vsyncpa [#allocation6], 0 }
   0x2   :  { %12 = vsyncpa [#allocation4], 0 }
   0x3   :  { %14 = vsyncpa [#allocation4 + $0x1], 0  ;;  %s2122_s18 = smov 0   ;;  %s2124_s19 = smov 0  }
   0x4   :  { %s2126_s20 = smov 0   ;;  %s2128_s21 = smov 0  }
   0x5 LB: > { %s2143_s22 = sadd.s32 4294967295, %s2079_s21   ;;  %s1502_s23 = sadd.s32 4294967294, %s2079_s21   ;;  %s2079_s21 = sphi %s2128_s21, %s2665_s21   ;;  %s2075_s20 = sphi %s2126_s20, %s2664_s20   ;;  %s2071_s19 = sphi %s2124_s19, %s2663_s19   ;;  %s2067_s18 = sphi %s2122_s18, %s2662_s18  }
   0x6   : > { %s2147_s24 = sadd.s32 1, %s2079_s21   ;;  %s137_s25 = sadd.s32 1, %s2075_s20 }
   0x7   : > { %s134_s26 = ssub.s32 %s2079_s21, %s2147_s24  ;;  %p147_p0 = scmp.ne.s32.totalorder %s2075_s20, %s2071_s19 }
   0x8   : > { %p135_p1 = scmp.eq.s32.totalorder %s134_s26, 0  ;;  %p148_p2 = scmp.eq.s32.totalorder %s2143_s22, 1 }
   0x9   : > { %p153_p3 = scmp.ne.s32.totalorder %s2071_s19, %s2067_s18  ;;  %p154_p4 = scmp.eq.s32.totalorder %s1502_s23, 1 }
   0xa   : > { %s2158_s27 = scalar_select %p135_p1, %s2075_s20, %s137_s25  }
   0xb   : > { %p2160_p5 = por %p148_p2, %p147_p0  ;;  %p2164_p6 = por %p154_p4, %p153_p3 }
   0xc   : > { %p1503_p7 = scmp.ge.s32.totalorder %s2079_s21, 1  ;;  %p161_p8 = scmp.lt.s32.totalorder %s2079_s21, 3 }
   0xd   : > { %s2634_s29 = scalar_select %p2164_p6, 1, 0 }
   0xe   : > { %p2632_p9 = scmp.eq.s32.totalorder %s2143_s22, 0  ;;  %p2171_p10 = pnand %p1503_p7, %p161_p8 }
   0xf   : > { %s2081_s6 = smov [#allocation2]   ;;  %s2082_s9 = smov [#allocation5]  }
  0x10   : > { %s173_s7 = sshll.u32 %s2081_s6, 4  ;;  %p1797_p11 = pneg %p2171_p10  ;;  %s174_s7 = int_to_ptr.vmem [resolvable:$true] %s173_s7 }
  0x11   : > { %s189_s10 = sshll.u32 %s2082_s9, 4  ;;  %s1970_s11 = scalar_lea.vmem %s174_s7, 6144  ;;  %s190_s10 = int_to_ptr.vmem [resolvable:$true] %s189_s10 }
  0x12   : > { %p2179_p12 = pnand %p2632_p9, %p1797_p11  ;;  %p1971_p0 = scmp.ne.s32.totalorder %s174_s7, %s1970_s11 }
  0x13   : > { %p1978_p3 = scmp.lt.s32.totalorder %s174_s7, %s174_s7  ;;  %p1979_p4 = scmp.lt.s32.totalorder %s1970_s11, %s1970_s11 }
  0x14   : > { %p1961_p13 = pneg %p2179_p12 }
  0x15   : > { %p1980_p7 = por %p1979_p4, %p1978_p3 }
  0x16   : > { %p1973_p1 = pnand %p1971_p0, %p1961_p13 }
  0x18   : > { %p1974_p2 = pneg %p1973_p1 }
  0x1a   : > { %p1981_p8 = pnand %p1980_p7, %p1974_p2 }
  0x1c   : > { %1984 = shalt.err (!%p1981_p8)
}
  0x1d   : > { %s2083_s12 = smov 128   ;;  %s2084_s13 = smov 8  }
  0x1e   : > { %1800 = dma.hbm_to_vmem [thread:$0]  (!%p2179_p12), %s2627_s1, 6144, %s174_s7, [#allocation3], %s2083_s12, %s2083_s12, %s2084_s13  }
  0x1f   : > { %s1996_s16 = scalar_lea.vmem %s190_s10, 3072  ;;  %p2004_p9 = scmp.lt.s32.totalorder %s190_s10, %s190_s10 }
  0x20   : > { %p1997_p11 = scmp.ne.s32.totalorder %s190_s10, %s1996_s16  ;;  %p2005_p6 = scmp.lt.s32.totalorder %s1996_s16, %s1996_s16 }
  0x22   : > { %p1999_p0 = pnand %p1997_p11, %p1961_p13  ;;  %p2006_p3 = por %p2005_p6, %p2004_p9 }
  0x24   : > { %p2000_p1 = pneg %p1999_p0 }
  0x26   : > { %p2007_p2 = pnand %p2006_p3, %p2000_p1 }
  0x28   : > { %2010 = shalt.err (!%p2007_p2)
}
  0x29   : > { %s2085_s17 = smov 64   ;;  %s2086_s23 = smov 4  }
  0x2a   : > { %1803 = dma.hbm_to_vmem [thread:$0]  (!%p2179_p12), %s2629_s3, 3072, %s190_s10, [#allocation6], %s2085_s17, %s2085_s17, %s2086_s23  }
  0x2b   : > { %217 = sbr.rel (%p2171_p10) target bundleno = 605 (0x25d), region = 40  ;;  %p2637_p4 = scmp.eq.s32.totalorder (!%p2171_p10), %s2143_s22, 0 }
  0x30   : > { %2054 = dma.done.wait (%p2637_p4), [#allocation3], 6144   ;;  %p2638_p13 = pmov %p2637_p4 }
  0x31   : > { %p2639_p6 = pmov %p2637_p4 }
  0x32   : > { %2056 = vsyncadd (%p2638_p13), [#allocation3], 4294961152 }
  0x33   : > { %2058 = dma.done.wait (%p2639_p6), [#allocation6], 3072   ;;  %p2640_p9 = pmov %p2637_p4 }
  0x34   : > { %v2087_v0 = vmov 0   ;;  %v1855_v1 = vld [vmem:[#allocation2 + $0x74] ss:$8 sps:$4 sm:$0xff]   ;;  %v1857_v2 = vld [vmem:[#allocation2 + $0x70] ss:$8 sps:$4 sm:$0xff]   ;;  %s1511_s30 = sshll.u32 %s2143_s22, 3  ;;  %v257_v21 = vlaneseq }
  0x35   : > { %2060 = vsyncadd (%p2640_p9), [#allocation6], 4294964224  ;;  %902 = vmatprep.mubr.bf16.mxu1 %v2087_v0  ;;  %797 = vmatprep.subr.bf16.mxu0 %v1855_v1  ;;  %v1858_v3 = vld [vmem:[#allocation2 + $0x64] ss:$8 sps:$4 sm:$0xff]   ;;  %v1860_v4 = vld [vmem:[#allocation2 + $0x60] ss:$8 sps:$4 sm:$0xff]  }
  0x36   : > { %798 = vmatpush1.bf16.msra.mxu0 %v1857_v2  ;;  %v1861_v5 = vld [vmem:[#allocation2 + $0x54] ss:$8 sps:$4 sm:$0xff]   ;;  %v1863_v6 = vld [vmem:[#allocation2 + $0x50] ss:$8 sps:$4 sm:$0xff]   ;;  %v1864_v7 = vld [vmem:[#allocation2 + $0x44] ss:$8 sps:$4 sm:$0xff]  }
  0x37   : > { %799 = vmatprep.subr.bf16.mxu0 %v1858_v3  ;;  %v1866_v8 = vld [vmem:[#allocation2 + $0x40] ss:$8 sps:$4 sm:$0xff]   ;;  %v1878_v9 = vld [vmem:[#allocation2 + $0x174] ss:$8 sps:$4 sm:$0xff]   ;;  %v1881_v10 = vld [vmem:[#allocation2 + $0x170] ss:$8 sps:$4 sm:$0xff]  }
  0x38   : > { %v1867_v11 = vld [vmem:[#allocation2 + $0x34] ss:$8 sps:$4 sm:$0xff]   ;;  %870 = vmatprep.subr.bf16.mxu1 %v1878_v9  ;;  %v1884_v12 = vld [vmem:[#allocation2 + $0x164] ss:$8 sps:$4 sm:$0xff]   ;;  %v1887_v13 = vld [vmem:[#allocation2 + $0x160] ss:$8 sps:$4 sm:$0xff]  }
  0x39   : > { %871 = vmatpush1.bf16.msra.mxu1 %v1881_v10  ;;  %v1869_v14 = vld [vmem:[#allocation2 + $0x30] ss:$8 sps:$4 sm:$0xff]   ;;  %v1870_v15 = vld [vmem:[#allocation2 + $0x24] ss:$8 sps:$4 sm:$0xff]   ;;  %v1890_v16 = vld [vmem:[#allocation2 + $0x154] ss:$8 sps:$4 sm:$0xff]  }
  0x3a   : > { %800 = vmatpush1.bf16.msra.mxu0 %v1860_v4  ;;  %872 = vmatprep.subr.bf16.mxu1 %v1884_v12  ;;  %p250_p10 = scmp.lt.s32.totalorder %s1511_s30, 15  ;;  %v1893_v17 = vld [vmem:[#allocation2 + $0x150] ss:$8 sps:$4 sm:$0xff]   ;;  %v1872_v18 = vld [vmem:[#allocation2 + $0x20] ss:$8 sps:$4 sm:$0xff]   ;;  %v2213_v26 = vshrl.u32 %v257_v21, 7 }
  0x3b   : > { %801 = vmatprep.subr.bf16.mxu0 %v1861_v5  ;;  %v1896_v19 = vld [vmem:[#allocation2 + $0x144] ss:$8 sps:$4 sm:$0xff]   ;;  %v1873_v20 = vld [vmem:[#allocation2 + $0x14] ss:$8 sps:$4 sm:$0xff]   ;;  %v1875_v22 = vld [vmem:[#allocation2 + $0x10] ss:$8 sps:$4 sm:$0xff]  }
  0x3c   : > { %s2667_s30 = smov (!%p250_p10, %s1511_s30), 15  ;;  %v1899_v23 = vld [vmem:[#allocation2 + $0x140] ss:$8 sps:$4 sm:$0xff]   ;;  %v1902_v24 = vld [vmem:[#allocation2 + $0x134] ss:$8 sps:$4 sm:$0xff]   ;;  %v270_v31 = vand.u32 15, %v2213_v26 }
  0x3d   : > { %873 = vmatpush1.bf16.msra.mxu1 %v1887_v13  ;;  %v1876_v25 = vld [vmem:[#allocation2 + $0x4] ss:$8 sps:$4 sm:$0xff]   ;;  %s1512_s6 = sshll.u32 %s2667_s30, 2  ;;  %v1905_v27 = vld [vmem:[#allocation2 + $0x130] ss:$8 sps:$4 sm:$0xff]   ;;  %vm378_vm0 = vcmask 523264  }
  0x3e   : > { %802 = vmatpush1.bf16.msra.mxu0 %v1863_v6  ;;  %874 = vmatprep.subr.bf16.mxu1 %v1890_v16  ;;  %v1880_v28 = vld [vmem:[#allocation2] ss:$8 sps:$4 sm:$0xff]   ;;  %v1908_v29 = vld [vmem:[#allocation2 + $0x124] ss:$8 sps:$4 sm:$0xff]   ;;  %v1882_v30 = vld [vmem:[#allocation2 + $0xf4] ss:$8 sps:$4 sm:$0xff]   ;;  %s2218_s9 = scalar_lea.vmem %s2626_s0, %s1512_s6 }
  0x3f   : > { %803 = vmatprep.subr.bf16.mxu0 %v1864_v7  ;;  %v1886_v32 = vld [vmem:[#allocation2 + $0xf0] ss:$8 sps:$4 sm:$0xff]   ;;  %v1911_v33 = vld [vmem:[#allocation2 + $0x120] ss:$8 sps:$4 sm:$0xff]   ;;  %v1914_v34 = vld [vmem:[#allocation2 + $0x114] ss:$8 sps:$4 sm:$0xff]  }
  0x40   : > { %v362_v35 = vld [vmem:[%s2218_s9] sm:$0xff]   ;;  %v2223_v39 = vld [vmem:[%s2218_s9 + $0x18] sm:$0xff]   ;;  %vm448_vm1 = vcmp.lt.s32.totalorder %v2213_v26, 2  ;;  %vm2229_vm2 = vcmp.ge.s32.totalorder %v270_v31, 2  ;;  %v364_v54 = vld [vmem:[%s2218_s9 + $0x8] sm:$0xff]   ;;  %vm2088_vm3 = vmmov 1  }
  0x41   : > { %875 = vmatpush1.bf16.msra.mxu1 %v1893_v17  ;;  %v1888_v36 = vld [vmem:[#allocation2 + $0xe4] ss:$8 sps:$4 sm:$0xff]   ;;  %v370_v37 = vunpack.c.l.bf16 %v362_v35  ;;  %v371_v38 = vunpack.c.h.bf16 %v362_v35  ;;  %v1917_v40 = vld [vmem:[#allocation2 + $0x110] ss:$8 sps:$4 sm:$0xff]   ;;  %v377_v41 = vunpack.c.h.bf16 %v2223_v39  ;;  %v1892_v45 = vld [vmem:[#allocation2 + $0xe0] ss:$8 sps:$4 sm:$0xff]   ;;  %v372_v60 = vunpack.c.l.bf16 %v364_v54 }
  0x42   : > { %804 = vmatpush1.bf16.msra.mxu0 %v1866_v8  ;;  %876 = vmatprep.subr.bf16.mxu1 %v1896_v19  ;;  %v1920_v46 = vld [vmem:[#allocation2 + $0x104] ss:$8 sps:$4 sm:$0xff]   ;;  %v1894_v49 = vld [vmem:[#allocation2 + $0xd4] ss:$8 sps:$4 sm:$0xff]   ;;  %v1898_v52 = vld [vmem:[#allocation2 + $0xd0] ss:$8 sps:$4 sm:$0xff]   ;;  %v373_v61 = vunpack.c.h.bf16 %v364_v54 }
  0x43   : > { %805 = vmatprep.subr.bf16.mxu0 %v1867_v11  ;;  %v2234_v43 = vsel %vm378_vm0, %v370_v37, 0.0  ;;  %v2237_v44 = vsel %vm378_vm0, %v371_v38, 0.0  ;;  %v2240_v47 = vsel %vm378_vm0, %v377_v41, 0.0  ;;  %v1923_v53 = vld [vmem:[#allocation2 + $0x100] ss:$8 sps:$4 sm:$0xff]   ;;  %vm2255_vm4 = vmpackc.low %vm2088_vm3, %vm2229_vm2  ;;  %v2268_v1 = vadd.s32 16, %v2213_v26 }
  0x44   : > { %v440_v48 = vrot.slane %v2234_v43, 6  ;;  %v441_v50 = vrot.slane %v2237_v44, 6  ;;  %v447_v51 = vrot.slane %v2240_v47, 6  ;;  %v1900_v58 = vld [vmem:[#allocation2 + $0xc4] ss:$8 sps:$4 sm:$0xff]   ;;  %vm2263_vm5 = vmpackc.low %vm378_vm0, %vm378_vm0  ;;  %v381_v3 = vsel %vm378_vm0, %v372_v60, 0.0 }
  0x45   : > { %877 = vmatpush1.bf16.msra.mxu1 %v1899_v23  ;;  %v1904_v63 = vld [vmem:[#allocation2 + $0xc0] ss:$8 sps:$4 sm:$0xff]   ;;  %v1906_v2 = vld [vmem:[#allocation2 + $0xb4] ss:$8 sps:$4 sm:$0xff]   ;;  %v2272_v4 = vsel %vm378_vm0, %v373_v61, 0.0  ;;  %v387_v11 = vrot.slane %v2234_v43, 4 }
  0x46   : > { %806 = vmatpush1.bf16.msra.mxu0 %v1869_v14  ;;  %878 = vmatprep.subr.bf16.mxu1 %v1902_v24  ;;  %v455_v55 = vsel %vm448_vm1, %v440_v48, %v441_v50  ;;  %v456_v56 = vsel %vm448_vm1, %v447_v51, %v440_v48  ;;  %v1910_v5 = vld [vmem:[#allocation2 + $0xb0] ss:$8 sps:$4 sm:$0xff]   ;;  %v1912_v6 = vld [vmem:[#allocation2 + $0xa4] ss:$8 sps:$4 sm:$0xff]   ;;  %v1916_v7 = vld [vmem:[#allocation2 + $0xa0] ss:$8 sps:$4 sm:$0xff]  }
  0x47   : > { %807 = vmatprep.subr.bf16.mxu0 %v1870_v15  ;;  %v1562_v59 = vpack.c.bf16 %v455_v55, %v456_v56  ;;  %v1918_v8 = vld [vmem:[#allocation2 + $0x94] ss:$8 sps:$4 sm:$0xff]   ;;  %v1922_v10 = vld [vmem:[#allocation2 + $0x90] ss:$8 sps:$4 sm:$0xff]   ;;  %v388_v12 = vrot.slane %v2237_v44, 4  ;;  %v394_v13 = vrot.slane %v2240_v47, 4 }
  0x48   : > { %v366_v9 = vld [vmem:[%s2218_s9 + $0x10] sm:$0xff]   ;;  %v1924_v14 = vld [vmem:[#allocation2 + $0x84] ss:$8 sps:$4 sm:$0xff]   ;;  %vm395_vm6 = vcmp.lt.s32.totalorder %v2213_v26, 4  ;;  %v442_v15 = vrot.slane %v381_v3, 6  ;;  %v443_v16 = vrot.slane %v2272_v4, 6 }
  0x49   : > { %879 = vmatpush1.bf16.msra.mxu1 %v1905_v27  ;;  %1563 = vmatprep.mubr.msk.bf16.mxu0 %vm2255_vm4, %v1562_v59  ;;  %v284_v17 = vand.u32 15, %v2268_v1  ;;  %v375_v19 = vunpack.c.h.bf16 %v366_v9  ;;  %v402_v21 = vsel %vm395_vm6, %v387_v11, %v388_v12  ;;  %vm404_vm7 = vcmp.ge.s32.totalorder %v270_v31, 4  ;;  %v2397_v47 = vld [vmem:[#allocation5 + $0xa0] sm:$0xff]   ;;  %s246_s14 = sand.u32 1, %s2071_s19   ;;  %s1671_s17 = sshll.u32 %s2143_s22, 9 }
  0x4a   : > { %808 = vmatpush1.bf16.msra.mxu0 %v1872_v18  ;;  %880 = vmatprep.subr.bf16.mxu1 %v1908_v29  ;;  %v374_v18 = vunpack.c.l.bf16 %v366_v9  ;;  %v453_v23 = vsel %vm448_vm1, %v442_v15, %v443_v16  ;;  %v454_v24 = vsel %vm448_vm1, %v441_v50, %v442_v15  ;;  %v262_v29 = vadd.s32 32, %v2213_v26  ;;  %vm2308_vm9 = vmpackc.low %vm2088_vm3, %vm404_vm7  ;;  %v2413_v15 = vld [vmem:[#allocation5 + $0x80] sm:$0xff]   ;;  %s1510_s15 = sshll.u32 %s246_s14, 5  ;;  %s2578_s30 = scalar_lea.hbm %s2631_s5, %s1671_s17 }
  0x4b   : > { %809 = vmatprep.subr.bf16.mxu0 %v1873_v20  ;;  %v1927_v20 = vld [vmem:[#allocation2 + $0x80] ss:$8 sps:$4 sm:$0xff]   ;;  %vm459_vm8 = vcmp.ge.s32.totalorder %v284_v17, 2  ;;  %vm406_vm11 = vcmp.ge.s32.totalorder %v284_v17, 4  ;;  %s2557_s16 = scalar_lea.vmem [#allocation7], %s1510_s15  ;;  %s2586_s6 = scalar_lea.sflag [#allocation4], %s246_s14 }
  0x4c   : > { %v383_v27 = vsel %vm378_vm0, %v374_v18, 0.0  ;;  %vm2314_vm10 = vmpackc.low %vm2088_vm3, %vm459_vm8  ;;  %v298_v38 = vand.u32 15, %v262_v29  ;;  %v1945_v17 = vld [vmem:[#allocation5 + $0x60] sm:$0xff]   ;;  %s1418_s23 = sshll.u32 %s2557_s16, 4  ;;  %s2089_s7 = smov [#allocation7]   ;;  %s2580_s23 = int_to_ptr.vmem [resolvable:$true] %s1418_s23 }
  0x4d   : > { %881 = vmatpush1.bf16.msra.mxu1 %v1911_v33  ;;  %v390_v33 = vrot.slane %v2272_v4, 4  ;;  %vm2342_vm13 = vmpackc.low %vm2088_vm3, %vm406_vm11  ;;  %v391_v50 = vrot.slane %v383_v27, 4  ;;  %v1946_v18 = vld [vmem:[#allocation5 + $0x20] sm:$0xff]   ;;  %s2011_s22 = scalar_lea.vmem %s2580_s23, 512  ;;  %s2015_s8 = sshll.u32 %s2089_s7, 4  ;;  %s2016_s8 = int_to_ptr.vmem [resolvable:$false] %s2015_s8 }
  0x4e   : > { %810 = vmatpush1.bf16.msra.mxu0 %v1875_v22  ;;  %882 = vmatprep.subr.bf16.mxu1 %v1914_v34  ;;  %v403_v22 = vsel %vm395_vm6, %v394_v13, %v387_v11  ;;  %v1568_v34 = vpack.c.bf16 %v453_v23, %v454_v24  ;;  %vm461_vm12 = vcmp.ge.s32.totalorder %v298_v38, 2  ;;  %vm408_vm15 = vcmp.ge.s32.totalorder %v298_v38, 4  ;;  %v1939_v11 = vld [vmem:[#allocation5 + $0x70] sm:$0xff]   ;;  %v1951_v23 = vld [vmem:[#allocation5 + $0x48] sm:$0xff]   ;;  %v545_v38 = vld [vmem:[%s2628_s2] sm:$0x3]  ;;  %p2012_p12 = scmp.ne.s32.totalorder %s2580_s23, %s2011_s22  ;;  %p2018_p11 = scmp.lt.s32.totalorder %s2580_s23, %s2016_s8 }
  0x4f   : > { %811 = vmatprep.subr.bf16.mxu0 %v1876_v25  ;;  %v2299_v25 = vld [vmem:[#allocation5 + $0xb8] sm:$0xff]   ;;  %vm2348_vm14 = vmpackc.low %vm2088_vm3, %vm461_vm12  ;;  %v1952_v24 = vld [vmem:[#allocation5 + $0x8] sm:$0xff]   ;;  %s2017_s9 = scalar_lea.vmem %s2016_s8, 1024 }
  0x50   : > { %vm2367_vm2 = vmpackc.low %vm2088_vm3, %vm408_vm15  ;;  %p2013_p7 = pnand %p2012_p12, %p2160_p5  ;;  %p2019_p0 = scmp.lt.s32.totalorder %s2017_s9, %s2011_s22 }
  0x51   : > { %883 = vmatpush1.bf16.msra.mxu1 %v1917_v40  ;;  %v376_v40 = vunpack.c.l.bf16 %v2223_v39 }
  0x52   : > { %812 = vmatpush1.bf16.msra.mxu0 %v1880_v28  ;;  %884 = vmatprep.subr.bf16.mxu1 %v1920_v46  ;;  %v384_v28 = vsel %vm378_vm0, %v375_v19, 0.0  ;;  %v264_v46 = vadd.s32 48, %v2213_v26  ;;  %v1947_v19 = vld [vmem:[#allocation5 + $0x58] sm:$0xff]   ;;  %p2014_p8 = pneg %p2013_p7  ;;  %p2020_p1 = por %p2019_p0, %p2018_p11 }
  0x53   : > { %813 = vmatprep.subr.bf16.mxu0 %v1882_v30  ;;  %v1565_v30 = vpack.c.bf16 %v402_v21, %v403_v22  ;;  %v445_v37 = vrot.slane %v384_v28, 6  ;;  %v1949_v21 = vld [vmem:[#allocation5 + $0x50] sm:$0xff]  }
  0x54   : > { %v1950_v22 = vld [vmem:[#allocation5 + $0x10] sm:$0xff]   ;;  %p2021_p3 = pnand %p2020_p1, %p2014_p8 }
  0x55   : > { %885 = vmatpush1.bf16.msra.mxu1 %v1923_v53 }
  0x56   : > { %814 = vmatpush2.bf16.msra.mxu0 %v1886_v32  ;;  %v389_v32 = vrot.slane %v381_v3, 4 }
  0x57   : > { %815 = vmatprep.subr.bf16.mxu0 %v1888_v36  ;;  %v444_v36 = vrot.slane %v383_v27, 6  ;;  %v1953_v27 = vld [vmem:[#allocation5 + $0x40] sm:$0xff]  }
  0x58   : > { %1587 = vmatmul.mubr.msk.bf16.vlgmr.msra.gmra.mxu1 %vm2263_vm5, %v362_v35  ;;  %v400_v41 = vsel %vm395_vm6, %v389_v32, %v390_v33  ;;  %v401_v42 = vsel %vm395_vm6, %v388_v12, %v389_v32  ;;  %v2409_v12 = vld [vmem:[#allocation5 + $0x88] sm:$0xff]  }
  0x59   : > { %912 = vmatprep.mubr.bf16.mxu1 %v2087_v0  ;;  %v451_v43 = vsel %vm448_vm1, %v444_v36, %v445_v37  ;;  %v452_v44 = vsel %vm448_vm1, %v443_v16, %v444_v36  ;;  %v1571_v48 = vpack.c.bf16 %v400_v41, %v401_v42  ;;  %v1943_v16 = vld [vmem:[#allocation5 + $0x28] sm:$0xff]   ;;  %v549_v36 = vsub.s32 0, %v2213_v26 }
  0x5a   : > { %816 = vmatpush2.bf16.msra.mxu0 %v1892_v45  ;;  %v385_v45 = vsel %vm378_vm0, %v376_v40, 0.0  ;;  %v1574_v53 = vpack.c.bf16 %v451_v43, %v452_v44  ;;  %v553_v40 = vsub.s32 1, %v2213_v26 }
  0x5b   : > { %817 = vmatprep.subr.bf16.mxu0 %v1894_v49  ;;  %v446_v55 = vrot.slane %v385_v45, 6  ;;  %v2423_v41 = vrot.slane %v545_v38, %v549_v36 }
  0x5c   : > { %v2425_v43 = vrot.slane %v545_v38, %v553_v40 }
  0x5d   : > { %v449_v59 = vsel %vm448_vm1, %v446_v55, %v447_v51  ;;  %v450_v60 = vsel %vm448_vm1, %v445_v37, %v446_v55 }
  0x5e   : > { %818 = vmatpush2.bf16.msra.mxu0 %v1898_v52  ;;  %v392_v52 = vrot.slane %v384_v28, 4  ;;  %v1580_v1 = vpack.c.bf16 %v449_v59, %v450_v60  ;;  %v1954_v28 = vld [vmem:[#allocation5] sm:$0xff]  }
  0x5f   : > { %819 = vmatprep.subr.bf16.mxu0 %v1900_v58  ;;  %v399_v58 = vsel %vm395_vm6, %v390_v33, %v391_v50 }
  0x60   : > { %1590 = vmatmul.mubr.msk.bf16.gmra.mxu1 %vm2263_vm5, %v364_v54  ;;  %v398_v56 = vsel %vm395_vm6, %v391_v50, %v392_v52 }
  0x61   : > { %922 = vmatprep.mubr.bf16.mxu1 %v2087_v0  ;;  %v1577_v61 = vpack.c.bf16 %v398_v56, %v399_v58 }
  0x62   : > { %820 = vmatpush2.bf16.msra.mxu0 %v1904_v63  ;;  %v393_v63 = vrot.slane %v385_v45, 4 }
  0x63   : > { %821 = vmatprep.subr.bf16.mxu0 %v1906_v2 }
  0x64   : > { %v396_v51 = vsel %vm395_vm6, %v393_v63, %v394_v13  ;;  %v397_v3 = vsel %vm395_vm6, %v392_v52, %v393_v63  ;;  %v1940_v13 = vld [vmem:[#allocation5 + $0x30] sm:$0xff]  }
  0x65   : > { %v1583_v4 = vpack.c.bf16 %v396_v51, %v397_v3 }
  0x66   : > { %822 = vmatpush2.bf16.msra.mxu0 %v1910_v5  ;;  %v2546_v5 = vld [vmem:[%s2630_s4] ss:$0 sm:$0xff] }
  0x67   : > { %823 = vmatprep.subr.bf16.mxu0 %v1912_v6  ;;  %v2393_v6 = vld [vmem:[#allocation5 + $0xa8] sm:$0xff]  }
  0x68   : > { %1593 = vmatmul.mubr.msk.bf16.gmra.mxu1 %vm2263_vm5, %v366_v9  ;;  %v2405_v9 = vld [vmem:[#allocation5 + $0x90] sm:$0xff]  }
  0x69   : > { %932 = vmatprep.mubr.bf16.mxu1 %v2087_v0  ;;  %v2319_v0 = vld [vmem:[#allocation5 + $0xb0] sm:$0xff]  }
  0x6a   : > { %824 = vmatpush2.bf16.msra.mxu0 %v1916_v7  ;;  %v2401_v7 = vld [vmem:[#allocation5 + $0x98] sm:$0xff]  }
  0x6b   : > { %825 = vmatprep.subr.bf16.mxu0 %v1918_v8  ;;  %v1936_v8 = vld [vmem:[#allocation5 + $0x78] sm:$0xff]  }
  0x6c   : > { %1695 = vmatprep.subr.bf16.mxu1 %v1936_v8 }
  0x6e   : > { %826 = vmatpush2.bf16.msra.mxu0 %v1922_v10  ;;  %v1937_v10 = vld [vmem:[#allocation5 + $0x38] sm:$0xff]  }
  0x6f   : > { %827 = vmatprep.subr.bf16.mxu0 %v1924_v14  ;;  %1696 = vmatpush3.bf16.msra.mxu1 %v1937_v10  ;;  %v1942_v14 = vld [vmem:[#allocation5 + $0x68] sm:$0xff]  }
  0x70   : > { %1596 = vmatmul.mubr.msk.bf16.gmra.mxu1 %vm2263_vm5, %v2223_v39  ;;  %v312_v39 = vand.u32 15, %v264_v46  ;;  %1697 = vmatprep.subr.bf16.mxu1 %v1939_v11 }
  0x72   : > { %828 = vmatpush2.bf16.msra.mxu0 %v1927_v20  ;;  %vm463_vm0 = vcmp.ge.s32.totalorder %v312_v39, 2  ;;  %vm410_vm7 = vcmp.ge.s32.totalorder %v312_v39, 4  ;;  %v1948_v20 = vld [vmem:[#allocation5 + $0x18] sm:$0xff]  }
  0x73   : > { %1747 = vmatprep.subr.bf16.mxu0 %v2299_v25  ;;  %vm2372_vm5 = vmpackc.low %vm2088_vm3, %vm463_vm0  ;;  %1698 = vmatpush3.bf16.msra.mxu1 %v1940_v13 }
  0x74   : > { %vm2387_vm8 = vmpackc.low %vm2088_vm3, %vm410_vm7  ;;  %1699 = vmatprep.subr.bf16.mxu1 %v1942_v14 }
  0x75   : > { %1566 = vmatmul.mubr.msk.bf16.vlgmr.msra.gmra.mxu0 %vm2308_vm9, %v1565_v30 }
  0x76   : > { %1569 = vmatprep.mubr.msk.bf16.mxu0 %vm2314_vm10, %v1568_v34  ;;  %1748 = vmatpush3.bf16.msra.mxu0 %v2299_v25 }
  0x77   : > { %1749 = vmatprep.subr.bf16.mxu0 %v2319_v0  ;;  %1700 = vmatpush3.bf16.msra.mxu1 %v1943_v16 }
  0x78   : > { %1701 = vmatprep.subr.bf16.mxu1 %v1945_v17 }
  0x7a   : > { %1750 = vmatpush3.bf16.msra.mxu0 %v2319_v0 }
  0x7b   : > { %1751 = vmatprep.subr.bf16.mxu0 %v2393_v6  ;;  %1702 = vmatpush3.bf16.msra.mxu1 %v1946_v18 }
  0x7c   : > { %1703 = vmatprep.subr.bf16.mxu1 %v1947_v19 }
  0x7d   : > { %1572 = vmatmul.mubr.msk.bf16.gmra.mxu0 %vm2342_vm13, %v1571_v48 }
  0x7e   : > { %1575 = vmatprep.mubr.msk.bf16.mxu0 %vm2348_vm14, %v1574_v53  ;;  %1752 = vmatpush3.bf16.msra.mxu0 %v2393_v6 }
  0x7f   : > { %1753 = vmatprep.subr.bf16.mxu0 %v2397_v47  ;;  %1704 = vmatpush3.bf16.msra.mxu1 %v1948_v20 }
  0x80   : > { %1705 = vmatprep.subr.bf16.mxu1 %v1949_v21 }
  0x82   : > { %1754 = vmatpush3.bf16.msra.mxu0 %v2397_v47 }
  0x83   : > { %1755 = vmatprep.subr.bf16.mxu0 %v2401_v7  ;;  %1706 = vmatpush3.bf16.msra.mxu1 %v1950_v22 }
  0x84   : > { %1707 = vmatprep.subr.bf16.mxu1 %v1951_v23 }
  0x85   : > { %1578 = vmatmul.mubr.msk.bf16.gmra.mxu0 %vm2367_vm2, %v1577_v61 }
  0x86   : > { %1581 = vmatprep.mubr.msk.bf16.mxu0 %vm2372_vm5, %v1580_v1  ;;  %1756 = vmatpush3.bf16.msra.mxu0 %v2401_v7 }
  0x87   : > { %1757 = vmatprep.subr.bf16.mxu0 %v2405_v9  ;;  %1708 = vmatpush3.bf16.msra.mxu1 %v1952_v24 }
  0x88   : > { %1709 = vmatprep.subr.bf16.mxu1 %v1953_v27 }
  0x8a   : > { %1758 = vmatpush3.bf16.msra.mxu0 %v2405_v9 }
  0x8b   : > { %1759 = vmatprep.subr.bf16.mxu0 %v2409_v12  ;;  %1710 = vmatpush3.bf16.msra.mxu1 %v1954_v28 }
  0x8c   : > { %1771 = vmatprep.subr.bf16.mxu1 %v2299_v25 }
  0x8d   : > { %1584 = vmatmul.mubr.msk.bf16.gmra.mxu0 %vm2387_vm8, %v1583_v4 }
  0x8e   : > { %1760 = vmatpush3.bf16.msra.mxu0 %v2409_v12 }
  0x8f   : > { %1761 = vmatprep.subr.bf16.mxu0 %v2413_v15 }
  0x92   : > { %1762 = vmatpush3.bf16.msra.mxu0 %v2413_v15 }
 0x118   : > { %v904_v29 = vpop.f32.mrf.mxu1 }
 0x11a   : > { %v906_v30 = vpop.f32.mrf.mxu1 }
 0x11c   : > { %v908_v32 = vpop.f32.mrf.mxu1 }
 0x11e   : > { %v910_v33 = vpop.f32.mrf.mxu1 }
 0x120   : > { %v914_v34 = vpop.f32.mrf.mxu1 }
 0x122   : > { %v916_v37 = vpop.f32.mrf.mxu1 }
 0x124   : > { %v918_v42 = vpop.f32.mrf.mxu1 }
 0x126   : > { %v920_v48 = vpop.f32.mrf.mxu1 }
 0x128   : > { %v924_v58 = vpop.f32.mrf.mxu1 }
 0x12a   : > { %v926_v8 = vpop.f32.mrf.mxu1 }
 0x12c   : > { %v928_v19 = vpop.f32.mrf.mxu1 }
 0x135   : > { %v831_v44 = vpop.f32.mrf.mxu0 }
 0x136   : > { %v832_v45 = vadd.f32 %v831_v44, %v2423_v41 }
 0x137   : > { %v833_v46 = vpop.f32.mrf.mxu0 }
 0x138   : > { %v834_v50 = vadd.f32 %v833_v46, %v2425_v43  ;;  %v905_v39 = vadd.f32 %v904_v29, %v832_v45  ;;  %v930_v29 = vpop.f32.mrf.mxu1 }
 0x139   : > { %v835_v52 = vpop.f32.mrf.mxu0 }
 0x13a   : > { %v2429_v53 = vadd.f32 %v906_v30, %v834_v50  ;;  %v836_v55 = vadd.f32 %v835_v52, %v2423_v41  ;;  %v943_v3 = vmax.f32 %v905_v39, 0.0  ;;  %v934_v36 = vpop.f32.mrf.mxu1 }
 0x13b   : > { %v837_v56 = vpop.f32.mrf.mxu0 }
 0x13c   : > { %v909_v59 = vadd.f32 %v908_v32, %v836_v55  ;;  %v838_v60 = vadd.f32 %v837_v56, %v2425_v43  ;;  %v936_v44 = vpop.f32.mrf.mxu1 }
 0x13d   : > { %v841_v61 = vpop.f32.mrf.mxu0 }
 0x13e   : > { %v2433_v63 = vmax.f32 %v909_v59, 0.0  ;;  %v2435_v1 = vadd.f32 %v910_v33, %v838_v60  ;;  %v842_v51 = vadd.f32 %v841_v61, %v2423_v41  ;;  %v938_v39 = vpop.f32.mrf.mxu1 }
 0x13f   : > { %v843_v4 = vpop.f32.mrf.mxu0 }
 0x140   : > { %v844_v10 = vadd.f32 %v843_v4, %v2425_v43  ;;  %v1007_v13 = vpack.c.bf16 %v2433_v63, %v943_v3  ;;  %v915_v14 = vadd.f32 %v914_v34, %v842_v51  ;;  %v952_v60 = vrot.slane %v2433_v63, 4  ;;  %v2541_v26 = vpop.f32.mrf.mxu1 }
 0x141   : > { %v845_v11 = vpop.f32.mrf.mxu0  ;;  %v980_v61 = vrot.slane %v2433_v63, 6 }
 0x142   : > { %v2440_v16 = vadd.f32 %v916_v37, %v844_v10  ;;  %v846_v17 = vadd.f32 %v845_v11, %v2423_v41  ;;  %1763 = vmatprep.mubr.bf16.mxu0 %v1007_v13  ;;  %v2444_v23 = vmax.f32 %v915_v14, 0.0  ;;  %v951_v10 = vrot.slane %v943_v3, 4 }
 0x143   : > { %v847_v18 = vpop.f32.mrf.mxu0  ;;  %v979_v11 = vrot.slane %v943_v3, 6 }
 0x144   : > { %v919_v20 = vadd.f32 %v918_v42, %v846_v17  ;;  %v848_v21 = vadd.f32 %v847_v18, %v2425_v43  ;;  %v981_v13 = vrot.slane %v2444_v23, 6 }
 0x145   : > { %v851_v22 = vpop.f32.mrf.mxu0  ;;  %v993_v63 = vsel %vm448_vm1, %v979_v11, %v980_v61 }
 0x146   : > { %v2446_v24 = vmax.f32 %v919_v20, 0.0  ;;  %v2448_v27 = vadd.f32 %v920_v48, %v848_v21  ;;  %v852_v56 = vadd.f32 %v851_v22, %v2423_v41  ;;  %v965_v20 = vsel %vm395_vm6, %v951_v10, %v952_v60 }
 0x147   : > { %v853_v28 = vpop.f32.mrf.mxu0 }
 0x148   : > { %v1008_v30 = vpack.c.bf16 %v2446_v24, %v2444_v23  ;;  %v854_v32 = vadd.f32 %v853_v28, %v2425_v43  ;;  %v982_v51 = vrot.slane %v2446_v24, 6  ;;  %v925_v14 = vadd.f32 %v924_v58, %v852_v56 }
 0x149   : > { %v855_v33 = vpop.f32.mrf.mxu0 }
 0x14a   : > { %1764 = vmatmul.mubr.bf16.vlgmr.msra.gmra.mxu0 %v1008_v30  ;;  %v2453_v34 = vadd.f32 %v926_v8, %v854_v32  ;;  %v856_v50 = vadd.f32 %v855_v33, %v2423_v41  ;;  %v991_v58 = vsel %vm448_vm1, %v981_v13, %v982_v51  ;;  %v992_v32 = vsel %vm448_vm1, %v980_v61, %v981_v13 }
 0x14b   : > { %v857_v37 = vpop.f32.mrf.mxu0  ;;  %v954_v33 = vrot.slane %v2446_v24, 4 }
 0x14c   : > { %v858_v38 = vadd.f32 %v857_v37, %v2425_v43  ;;  %v929_v4 = vadd.f32 %v928_v19, %v856_v50  ;;  %v1629_v37 = vpack.c.bf16 %v991_v58, %v992_v32 }
 0x14d   : > { %v861_v40 = vpop.f32.mrf.mxu0 }
 0x14e   : > { %v2456_v42 = vadd.f32 %v930_v29, %v858_v38  ;;  %v948_v21 = vmax.f32 %v929_v4, 0.0  ;;  %v947_v29 = vmax.f32 %v925_v14, 0.0  ;;  %v862_v30 = vadd.f32 %v861_v40, %v2423_v41 }
 0x14f   : > { %v863_v45 = vpop.f32.mrf.mxu0 }
 0x150   : > { %v864_v46 = vadd.f32 %v863_v45, %v2425_v43  ;;  %v984_v38 = vrot.slane %v948_v21, 6  ;;  %v935_v40 = vadd.f32 %v934_v36, %v862_v30  ;;  %v956_v36 = vrot.slane %v948_v21, 4 }
 0x151   : > { %v865_v48 = vpop.f32.mrf.mxu0 }
 0x152   : > { %v2460_v52 = vadd.f32 %v936_v44, %v864_v46  ;;  %v866_v55 = vadd.f32 %v865_v48, %v2423_v41  ;;  %v953_v44 = vrot.slane %v2444_v23, 4  ;;  %v983_v41 = vrot.slane %v947_v29, 6 }
 0x153   : > { %v949_v23 = vmax.f32 %v935_v40, 0.0  ;;  %v955_v46 = vrot.slane %v947_v29, 4 }
 0x154   : > { %v939_v59 = vadd.f32 %v938_v39, %v866_v55  ;;  %v963_v57 = vsel %vm395_vm6, %v953_v44, %v954_v33  ;;  %v989_v24 = vsel %vm448_vm1, %v983_v41, %v984_v38  ;;  %v964_v31 = vsel %vm395_vm6, %v952_v60, %v953_v44 }
 0x155   : > { %v990_v35 = vsel %vm448_vm1, %v982_v51, %v983_v41  ;;  %v961_v48 = vsel %vm395_vm6, %v955_v46, %v956_v36  ;;  %v962_v49 = vsel %vm395_vm6, %v954_v33, %v955_v46  ;;  %v957_v39 = vrot.slane %v949_v23, 4 }
 0x156   : > { %v2467_v8 = vmax.f32 %v939_v59, 0.0  ;;  %v1635_v45 = vpack.c.bf16 %v989_v24, %v990_v35  ;;  %v1009_v59 = vpack.c.bf16 %v948_v21, %v947_v29 }
 0x157   : > { %v960_v56 = vsel %vm395_vm6, %v956_v36, %v957_v39 }
 0x158   : > { %v958_v17 = vrot.slane %v2467_v8, 4  ;;  %v986_v18 = vrot.slane %v2467_v8, 6  ;;  %v1010_v2 = vpack.c.bf16 %v2467_v8, %v949_v23 }
 0x15a   : > { %v966_v19 = vsel %vm395_vm6, %v958_v17, %v951_v10  ;;  %v994_v3 = vsel %vm448_vm1, %v986_v18, %v979_v11 }
 0x15b   : > { %v1626_v22 = vpack.c.bf16 %v965_v20, %v966_v19  ;;  %v1623_v28 = vpack.c.bf16 %v993_v63, %v994_v3 }
 0x15d   : > { %1624 = vmatprep.mubr.msk.bf16.mxu1 %vm2255_vm4, %v1623_v28 }
 0x15e   : > { %1627 = vmatmul.mubr.msk.bf16.vlgmr.msra.gmra.mxu1 %vm2308_vm9, %v1626_v22 }
 0x15f   : > { %1779 = vmatpush3.bf16.msra.mxu1 %v2299_v25  ;;  %1630 = vmatprep.mubr.msk.bf16.mxu1 %vm2314_vm10, %v1629_v37  ;;  %v1632_v25 = vpack.c.bf16 %v963_v57, %v964_v31 }
 0x160   : > { %1772 = vmatprep.subr.bf16.mxu1 %v2319_v0 }
 0x163   : > { %1780 = vmatpush3.bf16.msra.mxu1 %v2319_v0  ;;  %v985_v0 = vrot.slane %v949_v23, 6 }
 0x164   : > { %1773 = vmatprep.subr.bf16.mxu1 %v2393_v6 }
 0x165   : > { %v987_v50 = vsel %vm448_vm1, %v985_v0, %v986_v18  ;;  %v988_v54 = vsel %vm448_vm1, %v984_v38, %v985_v0 }
 0x166   : > { %1633 = vmatmul.mubr.msk.bf16.gmra.mxu1 %vm2342_vm13, %v1632_v25  ;;  %v1641_v55 = vpack.c.bf16 %v987_v50, %v988_v54 }
 0x167   : > { %1781 = vmatpush3.bf16.msra.mxu1 %v2393_v6  ;;  %1636 = vmatprep.mubr.msk.bf16.mxu1 %vm2348_vm14, %v1635_v45  ;;  %v1638_v6 = vpack.c.bf16 %v961_v48, %v962_v49 }
 0x168   : > { %1774 = vmatprep.subr.bf16.mxu1 %v2397_v47 }
 0x16b   : > { %1782 = vmatpush3.bf16.msra.mxu1 %v2397_v47  ;;  %v959_v47 = vsel %vm395_vm6, %v957_v39, %v958_v17 }
 0x16c   : > { %1775 = vmatprep.subr.bf16.mxu1 %v2401_v7  ;;  %v1644_v62 = vpack.c.bf16 %v959_v47, %v960_v56 }
 0x16e   : > { %1639 = vmatmul.mubr.msk.bf16.gmra.mxu1 %vm2367_vm2, %v1638_v6 }
 0x16f   : > { %1783 = vmatpush3.bf16.msra.mxu1 %v2401_v7  ;;  %1642 = vmatprep.mubr.msk.bf16.mxu1 %vm2372_vm5, %v1641_v55  ;;  %v2539_v7 = vpop.f32.mrf.mxu0 }
 0x170   : > { %1776 = vmatprep.subr.bf16.mxu1 %v2405_v9 }
 0x173   : > { %1784 = vmatpush3.bf16.msra.mxu1 %v2405_v9 }
 0x174   : > { %1777 = vmatprep.subr.bf16.mxu1 %v2409_v12 }
 0x176   : > { %1645 = vmatmul.mubr.msk.bf16.gmra.mxu1 %vm2387_vm8, %v1644_v62 }
 0x177   : > { %1785 = vmatpush3.bf16.msra.mxu1 %v2409_v12  ;;  %1767 = vmatprep.mubr.bf16.mxu1 %v1009_v59 }
 0x178   : > { %1778 = vmatprep.subr.bf16.mxu1 %v2413_v15 }
 0x17b   : > { %1786 = vmatpush3.bf16.msra.mxu1 %v2413_v15 }
 0x17e   : > { %1768 = vmatmul.mubr.bf16.vlgmr.msra.gmra.mxu1 %v1010_v2 }
 0x20a   : > { %v1765_v9 = vpop.f32.mrf.mxu0 }
 0x20c   : > { %v1309_v61 = vpop.f32.mrf.mxu0 }
 0x20e   : > { %v1766_v8 = vpop.f32.mrf.mxu0 }
 0x210   : > { %v1312_v20 = vpop.f32.mrf.mxu0 }
 0x21e   : > { %v1711_v60 = vpop.f32.mrf.mxu1 }
 0x220   : > { %v1712_v12 = vpop.f32.mrf.mxu1 }
 0x221   : > { %v1713_v51 = vadd.f32 %v1712_v12, %v1711_v60 }
 0x222   : > { %v1714_v4 = vpop.f32.mrf.mxu1 }
 0x223   : > { %v1245_v15 = vadd.f32 %v1713_v51, %v2546_v5 }
 0x224   : > { %v1715_v10 = vpop.f32.mrf.mxu1 }
 0x225   : > { %v1310_v11 = vadd.f32 %v1309_v61, %v1245_v15  ;;  %v1716_v13 = vadd.f32 %v1715_v10, %v1714_v4 }
 0x226   : > { %v1717_v14 = vpop.f32.mrf.mxu1 }
 0x227   : > { %v1340_v17 = vmax.f32 %v1310_v11, 0.0  ;;  %v1248_v18 = vadd.f32 %v1716_v13, %v2546_v5 }
 0x228   : > { %v1718_v63 = vpop.f32.mrf.mxu1 }
 0x229   : > { %v1313_v21 = vadd.f32 %v1312_v20, %v1248_v18  ;;  %v1719_v19 = vadd.f32 %v1718_v63, %v1717_v14  ;;  %v1348_v58 = vadd.f32 %v1340_v17, %v2429_v53 }
 0x22a   : > { %v1720_v3 = vpop.f32.mrf.mxu1 }
 0x22b   : > { %v1341_v22 = vmax.f32 %v1313_v21, 0.0  ;;  %v1253_v28 = vadd.f32 %v1719_v19, %v2546_v5  ;;  %v1356_v38 = vmax.f32 %v1348_v58, 0.0 }
 0x22c   : > { %v1721_v29 = vpop.f32.mrf.mxu1 }
 0x22d   : > { %v1349_v30 = vadd.f32 %v1341_v22, %v2435_v1  ;;  %v1318_v32 = vadd.f32 %v1765_v9, %v1253_v28  ;;  %v1722_v33 = vadd.f32 %v1721_v29, %v1720_v3 }
 0x22e   : > { %v1723_v37 = vpop.f32.mrf.mxu1 }
 0x22f   : > { %v1357_v44 = vmax.f32 %v1349_v30, 0.0  ;;  %v1342_v41 = vmax.f32 %v1318_v32, 0.0  ;;  %v1256_v40 = vadd.f32 %v1722_v33, %v2546_v5 }
 0x230   : > { %v1724_v57 = vpop.f32.mrf.mxu1 }
 0x231   : > { %v1675_v24 = vpack.c.bf16 %v1357_v44, %v1356_v38  ;;  %v1321_v31 = vadd.f32 %v1766_v8, %v1256_v40  ;;  %v1350_v23 = vadd.f32 %v1342_v41, %v2440_v16  ;;  %v1725_v6 = vadd.f32 %v1724_v57, %v1723_v37 }
 0x232   : > { %v1726_v53 = vpop.f32.mrf.mxu1 }
 0x233   : > { %1676 = vst [vmem:[%s2557_s16] sm:$0xff] %v1675_v24   ;;  %v1343_v1 = vmax.f32 %v1321_v31, 0.0  ;;  %v1358_v45 = vmax.f32 %v1350_v23, 0.0  ;;  %v1261_v62 = vadd.f32 %v1725_v6, %v2546_v5 }
 0x234   : > { %v1727_v25 = vpop.f32.mrf.mxu1 }
 0x235   : > { %v1351_v35 = vadd.f32 %v1343_v1, %v2448_v27  ;;  %v1728_v56 = vadd.f32 %v1727_v25, %v1726_v53  ;;  %v868_v27 = vadd.f32 %v2539_v7, %v2425_v43 }
 0x236   : > { %v1729_v36 = vpop.f32.mrf.mxu1 }
 0x237   : > { %v1359_v46 = vmax.f32 %v1351_v35, 0.0  ;;  %v1264_v4 = vadd.f32 %v1728_v56, %v2546_v5  ;;  %v941_v8 = vadd.f32 %v2541_v26, %v868_v27 }
 0x238   : > { %v1730_v0 = vpop.f32.mrf.mxu1 }
 0x239   : > { %v1680_v48 = vpack.c.bf16 %v1359_v46, %v1358_v45  ;;  %v1731_v50 = vadd.f32 %v1730_v0, %v1729_v36 }
 0x23a   : > { %v1732_v49 = vpop.f32.mrf.mxu1 }
 0x23b   : > { %1692 = vst [vmem:[%s2557_s16 + $0x8] sm:$0xff] %v1680_v48   ;;  %v1269_v39 = vadd.f32 %v1731_v50, %v2546_v5 }
 0x23c   : > { %v1733_v54 = vpop.f32.mrf.mxu1 }
 0x23d   : > { %v1734_v55 = vadd.f32 %v1733_v54, %v1732_v49 }
 0x23e   : > { %v1769_v47 = vpop.f32.mrf.mxu1 }
 0x23f   : > { %v1334_v16 = vadd.f32 %v1769_v47, %v1269_v39  ;;  %v1272_v60 = vadd.f32 %v1734_v55, %v2546_v5 }
 0x240   : > { %v1325_v59 = vpop.f32.mrf.mxu1 }
 0x241   : > { %v1346_v2 = vmax.f32 %v1334_v16, 0.0  ;;  %v1326_v9 = vadd.f32 %v1325_v59, %v1261_v62 }
 0x242   : > { %v1770_v61 = vpop.f32.mrf.mxu1 }
 0x243   : > { %v1344_v12 = vmax.f32 %v1326_v9, 0.0  ;;  %v1337_v51 = vadd.f32 %v1770_v61, %v1272_v60  ;;  %v1354_v10 = vadd.f32 %v1346_v2, %v2460_v52 }
 0x244   : > { %v1328_v15 = vpop.f32.mrf.mxu1 }
 0x245   : > { %v1347_v11 = vmax.f32 %v1337_v51, 0.0  ;;  %v1329_v13 = vadd.f32 %v1328_v15, %v1264_v4  ;;  %v1352_v43 = vadd.f32 %v1344_v12, %v2453_v34  ;;  %v1362_v17 = vmax.f32 %v1354_v10, 0.0 }
 0x247   : > { %v1355_v7 = vadd.f32 %v1347_v11, %v941_v8  ;;  %v1345_v14 = vmax.f32 %v1329_v13, 0.0  ;;  %v1360_v5 = vmax.f32 %v1352_v43, 0.0 }
 0x249   : > { %v1363_v18 = vmax.f32 %v1355_v7, 0.0  ;;  %v1353_v20 = vadd.f32 %v1345_v14, %v2456_v42 }
 0x24b   : > { %v1690_v26 = vpack.c.bf16 %v1363_v18, %v1362_v17  ;;  %v1361_v63 = vmax.f32 %v1353_v20, 0.0 }
 0x24d   : > { %1694 = vst [vmem:[%s2557_s16 + $0x18] sm:$0xff] %v1690_v26   ;;  %v1685_v34 = vpack.c.bf16 %v1361_v63, %v1360_v5 }
 0x24f   : > { %1693 = vst [vmem:[%s2557_s16 + $0x10] sm:$0xff] %v1685_v34  }
 0x250   : > { %2024 = shalt.err (!%p2021_p3)
}
 0x251   : > { %s2025_s10 = scalar_lea.hbm %s2578_s30, 512  ;;  %s2029_s13 = scalar_lea.hbm %s2631_s5, 1024 }
 0x252   : > { %p2026_p2 = scmp.ne.s32.totalorder %s2578_s30, %s2025_s10  ;;  %p2030_p6 = scmp.lt.s32.totalorder %s2578_s30, %s2631_s5 }
 0x253   : > { %p2031_p9 = scmp.lt.s32.totalorder %s2029_s13, %s2025_s10 }
 0x254   : > { %p2027_p4 = pnand %p2026_p2, %p2160_p5 }
 0x255   : > { %p2032_p10 = por %p2031_p9, %p2030_p6 }
 0x256   : > { %p2028_p13 = pneg %p2027_p4 }
 0x258   : > { %p2033_p12 = pnand %p2032_p10, %p2028_p13 }
 0x25a   : > { %2036 = shalt.err (!%p2033_p12)
}
 0x25b   : > { %s2090_s16 = smov 64   ;;  %s2091_s17 = smov 4  }
 0x25c   : > { %1795 = dma.vmem_to_hbm [thread:$0]  (%p2160_p5), %s2580_s23, 512, %s2578_s30, %s2586_s6, %s2090_s16, %s2090_s16, %s2091_s17  }
 0x25d PF: > { %p1812_p7 = scmp.ge.s32.totalorder %s2079_s21, 2  ;;  %s1433_s25 = sand.u32 1, %s2067_s18  }
 0x25e   : > { %p2661_p8 = scmp.ne.s32.totalorder %s2634_s29, 0  ;;  %s1434_s26 = scalar_lea.sflag [#allocation4], %s1433_s25 }
 0x260   : > { %p1805_p11 = pnand %p1812_p7, %p2661_p8 }
 0x262   : > { %p1806_p0 = pneg %p1805_p11 }
 0x264   : > { %2062 = dma.done.wait (%p1806_p0), %s1434_s26, 512  }
 0x265   : > { %2064 = vsyncadd (%p1806_p0), %s1434_s26, 4294966784  ;;  %p17_p1 = scmp.ge.s32.totalorder %s2147_s24, 4   ;;  %s2662_s18 = smov %s2071_s19 }
 0x266   : > { %s2663_s19 = smov %s2075_s20  ;;  %s2664_s20 = smov %s2158_s27 }
 0x267   : > { %s2665_s21 = smov %s2147_s24  ;;  %19 = sbr.rel (!%p17_p1) target bundleno = 5 (0x5), region = 84 }
 0x26c   :  { %1439 = vsyncpa [#allocation3], 1 }
 0x26d   :  { %1441 = vsyncpa [#allocation3 + $0x1], 1 }
 0x26e   :  { %1442 = vsyncpa [#allocation6], 1 }
 0x26f   :  { %1443 = vsyncpa [#allocation4], 1 }
 0x270   :  { %1445 = vsyncpa [#allocation4 + $0x1], 1 }

</bundles_post_ra>
